<compile_context>
chip_gen: v7x
topology: tpu7x:2x2x1
jax: 0.10.0
libtpu: 0.0.40
codegen_flags: <defaults>
</compile_context>

<pallas_src>
import functools

import jax
import jax.numpy as jnp
from jax.experimental import pallas as pl
from jax.experimental.pallas import tpu as pltpu

# Constants matching the PyTorch module (`e` in the original source is the
# usual clamp epsilon used in this loss implementation).
ALPHA = 0.8
CE_RATIO = 0.5
SMOOTH = 1.0
EPS = 1e-7

_LANES = 128
_ALIGN = 32          # sublane alignment that packs densely for f32/bf16/int8
_MAX_ROW_TILE = 4096  # 2 MiB f32 per input tile


def _cdiv(a, b):
    return -(-a // b)


def _combo_partial_kernel(x_ref, t_ref, out_ref, *, row_tile, steps,
                          rows_in_last, needs_mask):
    s = pl.program_id(0)

    @pl.when(s == 0)
    def _init():
        out_ref[...] = jnp.zeros_like(out_ref)

    def body(valid_rows):
        x = x_ref[...].astype(jnp.float32)
        t = t_ref[...].astype(jnp.float32)

        keep = None
        if valid_rows is not None:
            rid = jax.lax.broadcasted_iota(jnp.int32, (row_tile, _LANES), 0)
            keep = rid < valid_rows

        def acc(idx, v):
            if keep is not None:
                v = jnp.where(keep, v, 0.0)
            # Row-block-only fold (pure VPU vreg adds); the one cross-lane
            # reduce happens in the JAX epilogue.
            # TODO(synk): if a v7x bundle dump shows the VALU slot saturated,
            # move this fold to the idle MXU via
            # jnp.dot(ones((8, row_tile)), v, preferred_element_type=f32).
            out_ref[idx, :, :] += jnp.sum(
                v.reshape(row_tile // 8, 8, _LANES), axis=0)

        # Dice partials use the *unclamped* inputs, as in the PyTorch code.
        acc(0, x * t)
        acc(1, x + t)
        xc = jnp.clip(x, EPS, 1.0 - EPS)
        acc(2, t * jnp.log(xc))
        acc(3, (1.0 - t) * jnp.log(1.0 - xc))

    if needs_mask:
        last = steps - 1

        @pl.when(s == last)
        def _masked_tail():
            body(rows_in_last)

        @pl.when(s != last)
        def _bulk():
            body(None)
    else:
        body(None)


def combo_loss(inputs, targets, smooth=SMOOTH, alpha=ALPHA, ratio=CE_RATIO,
               *, max_row_tile=_MAX_ROW_TILE):
    """Scalar Combo loss over arbitrarily shaped probability / target tensors."""
    xf = inputs.reshape(-1)
    tf = targets.reshape(-1)
    n = xf.shape[0]

    # ---- static tiling decisions (all plain Python ints) --------------------
    rows_real = _cdiv(n, _LANES)
    padded_rows = max(rows_real, _ALIGN)      # only tiny inputs get bumped
    padded_n = padded_rows * _LANES
    pad = padded_n - n

    if pad:
        # Minimal tail pad: < 128 zeros for lane-ragged inputs (< 4096 for tiny
        # inputs). Its exact CE contribution is removed in the epilogue.
        # TODO(synk): a 1-D pl.ANY + manual-DMA kernel could avoid even this
        # copy for very large lane-ragged streams.
        xk = jnp.pad(xf, (0, pad))
        tk = jnp.pad(tf, (0, pad))
    else:
        xk, tk = xf, tf
    x2 = xk.reshape(padded_rows, _LANES)      # bitcast view, no data movement
    t2 = tk.reshape(padded_rows, _LANES)

    # Kernel covers the leading 32-aligned block of rows; the (< 32-row) tail
    # is reduced in the epilogue straight from the original unpadded data, so
    # large sublane-ragged inputs never pay a host-side pad copy.
    rows_a = (padded_rows // _ALIGN) * _ALIGN
    tail_start = rows_a * _LANES
    tail_len = max(0, n - tail_start)
    pad_in_kernel = max(0, tail_start - n)    # zero-pad elems the kernel sees

    # Biggest 32-aligned tile <= max_row_tile, balanced so the last block is as
    # full as possible (usually no partial block at all).
    steps = _cdiv(rows_a, max_row_tile)
    row_tile = min(max_row_tile, _cdiv(_cdiv(rows_a, steps), _ALIGN) * _ALIGN)
    steps = _cdiv(rows_a, row_tile)
    if (steps - 1) * row_tile >= rows_a:      # fallback (only for enormous N)
        row_tile = max_row_tile
        steps = _cdiv(rows_a, row_tile)
    rows_in_last = rows_a - (steps - 1) * row_tile
    needs_mask = rows_in_last != row_tile

    kernel = functools.partial(
        _combo_partial_kernel,
        row_tile=row_tile,
        steps=steps,
        rows_in_last=rows_in_last,
        needs_mask=needs_mask,
    )

    partials = pl.pallas_call(
        kernel,
        out_shape=jax.ShapeDtypeStruct((4, 8, _LANES), jnp.float32),
        grid_spec=pltpu.PrefetchScalarGridSpec(
            num_scalar_prefetch=0,
            grid=(steps,),
            in_specs=[
                pl.BlockSpec((row_tile, _LANES), lambda s: (s, 0)),
                pl.BlockSpec((row_tile, _LANES), lambda s: (s, 0)),
            ],
            out_specs=pl.BlockSpec((4, 8, _LANES), lambda s: (0, 0, 0)),
        ),
        compiler_params=pltpu.CompilerParams(
            # Single sequential axis feeding the resident accumulator.
            # TODO(synk): on v7x, split the stream across the two TensorCores
            # (CORE_PARALLEL leading axis keyed on pltpu.get_tpu_info()) once
            # single-core VALU becomes the binding slot.
            dimension_semantics=("arbitrary",),
            vmem_limit_bytes=32 * 1024 * 1024,
        ),
    )(x2, t2)

    # ---- tiny epilogue: one cross-lane reduce + constant scaling ------------
    sums = jnp.sum(partials, axis=(1, 2))     # (4,)
    s_xt, s_xpt, s_p1, s_p2 = sums[0], sums[1], sums[2], sums[3]

    if tail_len:
        x_tail = xf[tail_start:].astype(jnp.float32)
        t_tail = tf[tail_start:].astype(jnp.float32)
        s_xt = s_xt + jnp.sum(x_tail * t_tail)
        s_xpt = s_xpt + jnp.sum(x_tail + t_tail)
        xc_tail = jnp.clip(x_tail, EPS, 1.0 - EPS)
        s_p1 = s_p1 + jnp.sum(t_tail * jnp.log(xc_tail))
        s_p2 = s_p2 + jnp.sum((1.0 - t_tail) * jnp.log(1.0 - xc_tail))

    if pad_in_kernel:
        # Each zero-pad element (x = t = 0) contributes exactly log(1 - EPS) to
        # s_p2 and nothing to the other partials; remove it in closed form.
        s_p2 = s_p2 - pad_in_kernel * jnp.log(1.0 - jnp.float32(EPS))

    dice = (2.0 * s_xt + smooth) / (s_xpt + smooth)
    ce_sum = -(alpha * (s_p1 + (1.0 - alpha) * s_p2))
    weighted_ce = ce_sum / n
    return ratio * weighted_ce - (1.0 - ratio) * dice


def _reference_combo(inputs, targets, smooth=SMOOTH, alpha=ALPHA, ratio=CE_RATIO):
    x = inputs.reshape(-1).astype(jnp.float32)
    t = targets.reshape(-1).astype(jnp.float32)
    inter = jnp.sum(x * t)
    dice = (2.0 * inter + smooth) / (jnp.sum(x) + jnp.sum(t) + smooth)
    xc = jnp.clip(x, EPS, 1.0 - EPS)
    out = -(alpha * (t * jnp.log(xc) + (1.0 - alpha) * (1.0 - t) * jnp.log(1.0 - xc)))
    weighted_ce = jnp.mean(out)
    return ratio * weighted_ce - (1.0 - ratio) * dice


if __name__ == "__main__":
    key = jax.random.PRNGKey(0)

    def _check(shape, k, **kwargs):
        k1, k2 = jax.random.split(k)
        probs = jax.nn.sigmoid(jax.random.normal(k1, shape, dtype=jnp.float32))
        tgts = jax.random.bernoulli(k2, p=0.4, shape=shape).astype(jnp.float32)
        loss = jax.block_until_ready(combo_loss(probs, tgts, **kwargs))
        ref = jax.block_until_ready(_reference_combo(probs, tgts))
        assert jnp.allclose(loss, ref, rtol=1e-5, atol=1e-5), (shape, loss, ref)

    k0, k1, k2, k3 = jax.random.split(key, 4)
    # NCHW like the PyTorch module would receive: tiny single-tile path.
    _check((2, 4, 16, 16), k0)
    # Lane-ragged size exercises the minimal-pad + closed-form CE correction.
    _check((2, 3, 15, 17), k1)
    # Larger size: one big tile + sub-32-row tail handled in the epilogue.
    _check((2, 4, 184, 184), k2)
    # Force the multi-step accumulator + masked-last-block path.
    _check((2, 4, 184, 184), k3, max_row_tile=512)

    print("KERNEL_OK")
</pallas_src>

<mosaic_0001>
module attributes {stable_mosaic.version = 11 : i64} {
  func.func @_combo_partial_kernel(%arg0: i32, %arg1: memref<32x128xf32, #tpu.memory_space<vmem>>, %arg2: memref<32x128xf32, #tpu.memory_space<vmem>>, %arg3: memref<4x8x128xf32, #tpu.memory_space<vmem>>) attributes {dimension_semantics = [#tpu.dimension_semantics<arbitrary>], iteration_bounds = array<i64: 1>, scalar_prefetch = 0 : i64, scratch_operands = 0 : i64, tpu.core_type = #tpu.core_type<tc>, window_params = [{transform_indices = @transform_0, window_bounds = array<i64: 32, 128>}, {transform_indices = @transform_1, window_bounds = array<i64: 32, 128>}, {pipeline_mode = #tpu.pipeline_mode<synchronous>, transform_indices = @transform_2, window_bounds = array<i64: 4, 8, 128>}]} {
    %c0_i32 = arith.constant 0 : i32
    %0 = arith.cmpi eq, %arg0, %c0_i32 : i32
    %1 = arith.extui %0 : i1 to i32
    %c0_i32_0 = arith.constant 0 : i32
    %2 = arith.cmpi ne, %1, %c0_i32_0 : i32
    scf.if %2 {
      %cst_32 = arith.constant 0.000000e+00 : f32
      %51 = vector.broadcast %cst_32 : f32 to vector<4x8x128xf32>
      %c0_33 = arith.constant 0 : index
      %c0_34 = arith.constant 0 : index
      %c0_35 = arith.constant 0 : index
      %52 = vector.load %arg3[%c0_33, %c0_34, %c0_35] : memref<4x8x128xf32, #tpu.memory_space<vmem>>, vector<4x8x128xf32>
      tpu.vector_store %arg3[%c0_33, %c0_34, %c0_35], %51 {strides = array<i32>} : memref<4x8x128xf32, #tpu.memory_space<vmem>>, vector<4x8x128xf32>,
    } else {
    }
    %c0 = arith.constant 0 : index
    %c0_1 = arith.constant 0 : index
    %3 = vector.load %arg1[%c0, %c0_1] : memref<32x128xf32, #tpu.memory_space<vmem>>, vector<32x128xf32>
    %c0_2 = arith.constant 0 : index
    %c0_3 = arith.constant 0 : index
    %4 = vector.load %arg2[%c0_2, %c0_3] : memref<32x128xf32, #tpu.memory_space<vmem>>, vector<32x128xf32>
    %5 = arith.mulf %3, %4 : vector<32x128xf32>
    %c0_4 = arith.constant 0 : index
    %c0_5 = arith.constant 0 : index
    %c0_6 = arith.constant 0 : index
    %6 = vector.load %arg3[%c0_4, %c0_5, %c0_6] : memref<4x8x128xf32, #tpu.memory_space<vmem>>, vector<1x8x128xf32>
    %7 = vector.shape_cast %6 : vector<1x8x128xf32> to vector<8x128xf32>
    %8 = vector.shape_cast %5 : vector<32x128xf32> to vector<4x8x128xf32>
    %cst = arith.constant dense<0.000000e+00> : vector<8x128xf32>
    %9 = vector.multi_reduction <add>, %8, %cst [0] : vector<4x8x128xf32> to vector<8x128xf32>
    %10 = arith.addf %7, %9 : vector<8x128xf32>
    %c0_7 = arith.constant 0 : index
    %c0_8 = arith.constant 0 : index
    %c0_9 = arith.constant 0 : index
    %11 = vector.load %arg3[%c0_7, %c0_8, %c0_9] : memref<4x8x128xf32, #tpu.memory_space<vmem>>, vector<1x8x128xf32>
    %12 = vector.shape_cast %11 : vector<1x8x128xf32> to vector<8x128xf32>
    %13 = vector.shape_cast %10 : vector<8x128xf32> to vector<1x8x128xf32>
    tpu.vector_store %arg3[%c0_7, %c0_8, %c0_9], %13 {strides = array<i32>} : memref<4x8x128xf32, #tpu.memory_space<vmem>>, vector<1x8x128xf32>,
    %14 = arith.addf %3, %4 : vector<32x128xf32>
    %c1 = arith.constant 1 : index
    %c0_10 = arith.constant 0 : index
    %c0_11 = arith.constant 0 : index
    %15 = vector.load %arg3[%c1, %c0_10, %c0_11] : memref<4x8x128xf32, #tpu.memory_space<vmem>>, vector<1x8x128xf32>
    %16 = vector.shape_cast %15 : vector<1x8x128xf32> to vector<8x128xf32>
    %17 = vector.shape_cast %14 : vector<32x128xf32> to vector<4x8x128xf32>
    %cst_12 = arith.constant dense<0.000000e+00> : vector<8x128xf32>
    %18 = vector.multi_reduction <add>, %17, %cst_12 [0] : vector<4x8x128xf32> to vector<8x128xf32>
    %19 = arith.addf %16, %18 : vector<8x128xf32>
    %c1_13 = arith.constant 1 : index
    %c0_14 = arith.constant 0 : index
    %c0_15 = arith.constant 0 : index
    %20 = vector.load %arg3[%c1_13, %c0_14, %c0_15] : memref<4x8x128xf32, #tpu.memory_space<vmem>>, vector<1x8x128xf32>
    %21 = vector.shape_cast %20 : vector<1x8x128xf32> to vector<8x128xf32>
    %22 = vector.shape_cast %19 : vector<8x128xf32> to vector<1x8x128xf32>
    tpu.vector_store %arg3[%c1_13, %c0_14, %c0_15], %22 {strides = array<i32>} : memref<4x8x128xf32, #tpu.memory_space<vmem>>, vector<1x8x128xf32>,
    %cst_16 = arith.constant 1.000000e-07 : f32
    %cst_17 = arith.constant 0.99999988 : f32
    %23 = vector.broadcast %cst_16 : f32 to vector<32x128xf32>
    %24 = arith.maximumf %23, %3 : vector<32x128xf32>
    %25 = vector.broadcast %cst_17 : f32 to vector<32x128xf32>
    %26 = arith.minimumf %25, %24 : vector<32x128xf32>
    %27 = math.log %26 : vector<32x128xf32>
    %28 = arith.mulf %4, %27 : vector<32x128xf32>
    %c2 = arith.constant 2 : index
    %c0_18 = arith.constant 0 : index
    %c0_19 = arith.constant 0 : index
    %29 = vector.load %arg3[%c2, %c0_18, %c0_19] : memref<4x8x128xf32, #tpu.memory_space<vmem>>, vector<1x8x128xf32>
    %30 = vector.shape_cast %29 : vector<1x8x128xf32> to vector<8x128xf32>
    %31 = vector.shape_cast %28 : vector<32x128xf32> to vector<4x8x128xf32>
    %cst_20 = arith.constant dense<0.000000e+00> : vector<8x128xf32>
    %32 = vector.multi_reduction <add>, %31, %cst_20 [0] : vector<4x8x128xf32> to vector<8x128xf32>
    %33 = arith.addf %30, %32 : vector<8x128xf32>
    %c2_21 = arith.constant 2 : index
    %c0_22 = arith.constant 0 : index
    %c0_23 = arith.constant 0 : index
    %34 = vector.load %arg3[%c2_21, %c0_22, %c0_23] : memref<4x8x128xf32, #tpu.memory_space<vmem>>, vector<1x8x128xf32>
    %35 = vector.shape_cast %34 : vector<1x8x128xf32> to vector<8x128xf32>
    %36 = vector.shape_cast %33 : vector<8x128xf32> to vector<1x8x128xf32>
    tpu.vector_store %arg3[%c2_21, %c0_22, %c0_23], %36 {strides = array<i32>} : memref<4x8x128xf32, #tpu.memory_space<vmem>>, vector<1x8x128xf32>,
    %cst_24 = arith.constant 1.000000e+00 : f32
    %37 = vector.broadcast %cst_24 : f32 to vector<32x128xf32>
    %38 = arith.subf %37, %4 : vector<32x128xf32>
    %cst_25 = arith.constant 1.000000e+00 : f32
    %39 = vector.broadcast %cst_25 : f32 to vector<32x128xf32>
    %40 = arith.subf %39, %26 : vector<32x128xf32>
    %41 = math.log %40 : vector<32x128xf32>
    %42 = arith.mulf %38, %41 : vector<32x128xf32>
    %c3 = arith.constant 3 : index
    %c0_26 = arith.constant 0 : index
    %c0_27 = arith.constant 0 : index
    %43 = vector.load %arg3[%c3, %c0_26, %c0_27] : memref<4x8x128xf32, #tpu.memory_space<vmem>>, vector<1x8x128xf32>
    %44 = vector.shape_cast %43 : vector<1x8x128xf32> to vector<8x128xf32>
    %45 = vector.shape_cast %42 : vector<32x128xf32> to vector<4x8x128xf32>
    %cst_28 = arith.constant dense<0.000000e+00> : vector<8x128xf32>
    %46 = vector.multi_reduction <add>, %45, %cst_28 [0] : vector<4x8x128xf32> to vector<8x128xf32>
    %47 = arith.addf %44, %46 : vector<8x128xf32>
    %c3_29 = arith.constant 3 : index
    %c0_30 = arith.constant 0 : index
    %c0_31 = arith.constant 0 : index
    %48 = vector.load %arg3[%c3_29, %c0_30, %c0_31] : memref<4x8x128xf32, #tpu.memory_space<vmem>>, vector<1x8x128xf32>
    %49 = vector.shape_cast %48 : vector<1x8x128xf32> to vector<8x128xf32>
    %50 = vector.shape_cast %47 : vector<8x128xf32> to vector<1x8x128xf32>
    tpu.vector_store %arg3[%c3_29, %c0_30, %c0_31], %50 {strides = array<i32>} : memref<4x8x128xf32, #tpu.memory_space<vmem>>, vector<1x8x128xf32>,
    return
  }
  func.func @transform_0(%arg0: i32) -> (i32, i32) {
    %c0_i32 = arith.constant 0 : i32
    %c0_i32_0 = arith.constant 0 : i32
    return %arg0, %c0_i32 : i32, i32
  }
  func.func @transform_1(%arg0: i32) -> (i32, i32) {
    %c0_i32 = arith.constant 0 : i32
    %c0_i32_0 = arith.constant 0 : i32
    return %arg0, %c0_i32 : i32, i32
  }
  func.func @transform_2(%arg0: i32) -> (i32, i32, i32) {
    %c0_i32 = arith.constant 0 : i32
    %c0_i32_0 = arith.constant 0 : i32
    %c0_i32_1 = arith.constant 0 : i32
    %c0_i32_2 = arith.constant 0 : i32
    return %c0_i32, %c0_i32_0, %c0_i32_1 : i32, i32, i32
  }
}

</mosaic_0001>

<bundles_post_ra>
// kernel: tpu_custom_call.1
= control target key start
LH: loop header
LB: loop body
LE: loop exit
PB: predicated region body
PF: predicated region fallthrough
CT: control target
= control target key end

     0   :  { %7 = vsyncpa [#allocation3], 0  ;;  %s332_s0 = inlined_call_operand.hbm [shape: f32[32,128], index: 0, kind: input, shape index: {}]   ;;  %s333_s1 = inlined_call_operand.hbm [shape: f32[32,128], index: 1, kind: input, shape index: {}]   ;;  %s334_s2 = inlined_call_operand.hbm [shape: f32[4,8,128], index: 2, kind: output, shape index: {}]  }
   0x1   :  { %8 = vsyncpa [#allocation6], 0 }
   0x2   :  { %9 = vsyncpa [#allocation4], 0  ;;  %s243_s9 = smov [#allocation2]   ;;  %s171_s13 = scalar_lea.hbm %s332_s0, 512 }
   0x3   :  { %s15_s10 = sshll.u32 %s243_s9, 4  ;;  %p172_p0 = scmp.ne.s32.totalorder %s332_s0, %s171_s13  ;;  %s16_s10 = int_to_ptr.vmem [resolvable:$true] %s15_s10 }
   0x4   :  { %p175_p1 = scmp.lt.u32.totalorder %s171_s13, %s332_s0 }
   0x6   :  { %p177_p2 = pnand %p175_p1, %p172_p0 }
   0x8   :  { %180 = shalt.err (!%p177_p2)
}
   0x9   :  { %s181_s18 = scalar_lea.vmem %s16_s10, 512  ;;  %p186_p4 = scmp.lt.s32.totalorder %s16_s10, %s16_s10 }
   0xa   :  { %p182_p3 = scmp.ne.s32.totalorder %s16_s10, %s181_s18  ;;  %p187_p5 = scmp.lt.s32.totalorder %s181_s18, %s181_s18 }
   0xc   :  { %p188_p6 = por %p187_p5, %p186_p4 }
   0xe   :  { %p189_p7 = pnand %p188_p6, %p182_p3 }
  0x10   :  { %192 = shalt.err (!%p189_p7)
}
  0x11   :  { %s244_s19 = smov 128   ;;  %s245_s20 = smov 8  }
  0x12   :  { %21 = dma.hbm_to_vmem [thread:$0]  %s332_s0, 512, %s16_s10, [#allocation3], %s244_s19, %s244_s19, %s245_s20  }
  0x13   :  { %s246_s23 = smov [#allocation5]   ;;  %s193_s27 = scalar_lea.hbm %s333_s1, 512 }
  0x14   :  { %s27_s24 = sshll.u32 %s246_s23, 4  ;;  %p194_p8 = scmp.ne.s32.totalorder %s333_s1, %s193_s27  ;;  %s28_s24 = int_to_ptr.vmem [resolvable:$true] %s27_s24 }
  0x15   :  { %p197_p9 = scmp.lt.u32.totalorder %s193_s27, %s333_s1 }
  0x17   :  { %p199_p10 = pnand %p197_p9, %p194_p8 }
  0x19   :  { %202 = shalt.err (!%p199_p10)
}
  0x1a   :  { %s203_s4 = scalar_lea.vmem %s28_s24, 512  ;;  %p208_p12 = scmp.lt.s32.totalorder %s28_s24, %s28_s24 }
  0x1b   :  { %p204_p11 = scmp.ne.s32.totalorder %s28_s24, %s203_s4  ;;  %p209_p13 = scmp.lt.s32.totalorder %s203_s4, %s203_s4 }
  0x1d   :  { %p210_p0 = por %p209_p13, %p208_p12 }
  0x1f   :  { %p211_p1 = pnand %p210_p0, %p204_p11 }
  0x21   :  { %214 = shalt.err (!%p211_p1)
}
  0x22   :  { %33 = dma.hbm_to_vmem [thread:$0]  %s333_s1, 512, %s28_s24, [#allocation6], %s244_s19, %s244_s19, %s245_s20  }
  0x23   :  { %237 = dma.done.wait [#allocation3], 512  }
  0x24   :  { %238 = vsyncadd [#allocation3], 4294966784 }
  0x25   :  { %239 = dma.done.wait [#allocation6], 512  }
  0x26   :  { %240 = vsyncadd [#allocation6], 4294966784  ;;  %v48_v0 = vld [vmem:[#allocation2] sm:$0xff]  ;;  %v49_v1 = vld [vmem:[#allocation2 + $0x8] sm:$0xff]  ;;  %s247_s1 = smov [#allocation7]  }
  0x27   :  { %v50_v2 = vld [vmem:[#allocation2 + $0x10] sm:$0xff]  ;;  %v51_v3 = vld [vmem:[#allocation2 + $0x18] sm:$0xff]  ;;  %v293_v4 = vld [vmem:[#allocation5] sm:$0xff]  ;;  %v77_v6 = vmax.f32 %v48_v0, 1e-07  ;;  %s136_s6 = sshll.u32 %s247_s1, 4  ;;  %s137_s6 = int_to_ptr.vmem [resolvable:$true] %s136_s6 }
  0x28   :  { %v295_v5 = vld [vmem:[#allocation5 + $0x8] sm:$0xff]  ;;  %v297_v7 = vld [vmem:[#allocation5 + $0x10] sm:$0xff]  ;;  %v299_v8 = vld [vmem:[#allocation5 + $0x18] sm:$0xff]  ;;  %v56_v9 = vmul.f32 %v293_v4, %v48_v0  ;;  %v78_v11 = vmax.f32 %v49_v1, 1e-07  ;;  %v66_v19 = vadd.f32 %v293_v4, %v48_v0  ;;  %v104_v42 = vsub.f32 1.0, %v293_v4  ;;  %p220_p3 = scmp.lt.s32.totalorder %s137_s6, %s137_s6 }
  0x29   :  { %v57_v10 = vmul.f32 %v295_v5, %v49_v1  ;;  %v79_v12 = vmax.f32 %v50_v2, 1e-07  ;;  %v58_v13 = vmul.f32 %v297_v7, %v50_v2  ;;  %v59_v14 = vmul.f32 %v299_v8, %v51_v3  ;;  %s215_s7 = scalar_lea.vmem %s137_s6, 512 }
  0x2a   :  { %v80_v15 = vmax.f32 %v51_v3, 1e-07  ;;  %v81_v17 = vmin.f32 %v77_v6, 0.9999999  ;;  %v82_v18 = vmin.f32 %v78_v11, 0.9999999  ;;  %v67_v22 = vadd.f32 %v295_v5, %v49_v1  ;;  %p216_p2 = scmp.ne.s32.totalorder %s137_s6, %s215_s7  ;;  %p221_p4 = scmp.lt.s32.totalorder %s215_s7, %s215_s7 }
  0x2b   :  { %v61_v16 = vadd.f32 %v57_v10, %v56_v9  ;;  %v83_v20 = vmin.f32 %v79_v12, 0.9999999  ;;  %v68_v23 = vadd.f32 %v297_v7, %v50_v2  ;;  %v69_v25 = vadd.f32 %v299_v8, %v51_v3 }
  0x2c   :  { %v84_v21 = vmin.f32 %v80_v15, 0.9999999  ;;  %155 = vlog2.f32 %v81_v17  ;;  %v72_v26 = vadd.f32 %v67_v22, %v66_v19  ;;  %v108_v28 = vsub.f32 1.0, %v81_v17  ;;  %p222_p5 = por %p221_p4, %p220_p3 }
  0x2d   :  { %v62_v24 = vadd.f32 %v61_v16, %v58_v13  ;;  %157 = vlog2.f32 %v82_v18  ;;  %v109_v29 = vsub.f32 1.0, %v82_v18  ;;  %v110_v31 = vsub.f32 1.0, %v83_v20 }
  0x2e   :  { %159 = vlog2.f32 %v83_v20  ;;  %v73_v30 = vadd.f32 %v72_v26, %v68_v23  ;;  %v111_v32 = vsub.f32 1.0, %v84_v21  ;;  %v105_v46 = vsub.f32 1.0, %v295_v5  ;;  %p223_p6 = pnand %p222_p5, %p216_p2 }
  0x2f   :  { %v63_v27 = vadd.f32 %v62_v24, %v59_v14  ;;  %161 = vlog2.f32 %v84_v21  ;;  %v106_v49 = vsub.f32 1.0, %v297_v7  ;;  %v107_v54 = vsub.f32 1.0, %v299_v8 }
  0x30   :  { %163 = vlog2.f32 %v108_v28  ;;  %v74_v33 = vadd.f32 %v73_v30, %v69_v25 }
  0x31   :  { %165 = vlog2.f32 %v109_v29  ;;  %65 = vst [vmem:[#allocation7] sm:$0xff] %v63_v27 }
  0x32   :  { %167 = vlog2.f32 %v110_v31  ;;  %76 = vst [vmem:[#allocation7 + $0x8] sm:$0xff] %v74_v33 }
  0x33   :  { %169 = vlog2.f32 %v111_v32 }
  0x36   :  { %v156_v34 = vpop.eup %155 }
  0x37   :  { %v158_v35 = vpop.eup %157  ;;  %v86_v36 = vmul.f32 0.6931472, %v156_v34 }
  0x38   :  { %v160_v37 = vpop.eup %159  ;;  %v88_v38 = vmul.f32 0.6931472, %v158_v35 }
  0x39   :  { %v162_v39 = vpop.eup %161  ;;  %v90_v40 = vmul.f32 0.6931472, %v160_v37  ;;  %v93_v41 = vmul.f32 %v86_v36, %v293_v4 }
  0x3a   :  { %v164_v43 = vpop.eup %163  ;;  %v92_v44 = vmul.f32 0.6931472, %v162_v39  ;;  %v94_v45 = vmul.f32 %v88_v38, %v295_v5 }
  0x3b   :  { %v166_v47 = vpop.eup %165  ;;  %v95_v48 = vmul.f32 %v90_v40, %v297_v7  ;;  %v113_v50 = vmul.f32 0.6931472, %v164_v43 }
  0x3c   :  { %v168_v51 = vpop.eup %167  ;;  %v96_v52 = vmul.f32 %v92_v44, %v299_v8  ;;  %v99_v53 = vadd.f32 %v94_v45, %v93_v41  ;;  %v115_v55 = vmul.f32 0.6931472, %v166_v47 }
  0x3d   :  { %v170_v56 = vpop.eup %169  ;;  %v117_v57 = vmul.f32 0.6931472, %v168_v51  ;;  %v120_v58 = vmul.f32 %v113_v50, %v104_v42 }
  0x3e   :  { %v100_v59 = vadd.f32 %v99_v53, %v95_v48  ;;  %v119_v60 = vmul.f32 0.6931472, %v170_v56  ;;  %v121_v61 = vmul.f32 %v115_v55, %v105_v46 }
  0x3f   :  { %v122_v62 = vmul.f32 %v117_v57, %v106_v49 }
  0x40   :  { %v101_v63 = vadd.f32 %v100_v59, %v96_v52  ;;  %v123_v0 = vmul.f32 %v119_v60, %v107_v54  ;;  %v126_v1 = vadd.f32 %v121_v61, %v120_v58 }
  0x42   :  { %v127_v2 = vadd.f32 %v126_v1, %v122_v62  ;;  %103 = vst [vmem:[#allocation7 + $0x10] sm:$0xff] %v101_v63 }
  0x44   :  { %v128_v3 = vadd.f32 %v127_v2, %v123_v0 }
  0x46   :  { %130 = vst [vmem:[#allocation7 + $0x18] sm:$0xff] %v128_v3 }
  0x47   :  { %226 = shalt.err (!%p223_p6)
}
  0x48   :  { %s227_s10 = scalar_lea.hbm %s334_s2, 512 }
  0x49   :  { %p228_p7 = scmp.ne.s32.totalorder %s334_s2, %s227_s10  ;;  %p231_p8 = scmp.lt.u32.totalorder %s227_s10, %s334_s2 }
  0x4b   :  { %p233_p9 = pnand %p231_p8, %p228_p7 }
  0x4d   :  { %236 = shalt.err (!%p233_p9)
}
  0x4e   :  { %142 = dma.vmem_to_hbm [thread:$0]  %s137_s6, 512, %s334_s2, [#allocation4], %s244_s19, %s244_s19, %s245_s20  }
  0x4f   :  { %241 = dma.done.wait [#allocation4], 512  }
  0x50   :  { %242 = vsyncadd [#allocation4], 4294966784 }
  0x51   :  { %146 = vsyncpa [#allocation3], 1 }
  0x52   :  { %147 = vsyncpa [#allocation6], 1 }
  0x53   :  { %148 = vsyncpa [#allocation4], 1 }

</bundles_post_ra>
